<compile_context>
chip_gen: v5e
topology: v5e:2x2
jax: 0.10.0
libtpu: 0.0.40
codegen_flags: <defaults>
</compile_context>

<pallas_src>
import jax
import jax.numpy as jnp
from jax.experimental import pallas as pl
from jax.experimental.pallas import tpu as pltpu


def _round_up(a, b):
    return ((a + b - 1) // b) * b


def _finetuned_kernel(x_ref, wp_ref, bp_ref, wf_ref, bf_ref, o_ref):
    # Feature projection on the MXU, f32 accumulation.
    h = jnp.dot(x_ref[...], wp_ref[...], preferred_element_type=jnp.float32)
    # Bias + ReLU in f32 on the VPU (kept f32 even on the bf16 path).
    h = jnp.maximum(h + bp_ref[...], 0.0)
    # Classifier head: downcast only the MXU input to the weight dtype.
    logits = (
        jnp.dot(h.astype(wf_ref.dtype), wf_ref[...],
                preferred_element_type=jnp.float32)
        + bf_ref[...]
    )
    o_ref[...] = logits.astype(o_ref.dtype)


def finetuned_forward(x, w_proj, b_proj, w_fc, b_fc, *, row_tile=2048,
                      cast_weights_bf16=False):
    """x: (B, T, D_in) -> logits (B, T, num_classes). f32 output.

    For the bf16 fast path, pass `x` already in bf16 (activation dtype from the
    upstream producer) and set cast_weights_bf16=True; the kernel accumulates
    in f32 and keeps bias + ReLU in f32.
    """
    B, T, D_in = x.shape
    P = w_proj.shape[1]          # feature-extractor output_dims
    C = w_fc.shape[1]            # num_classes
    M = B * T

    x2d = x.reshape(M, D_in)

    # --- Row tiling: multiple of 8, no larger than needed, capped so the grid
    #     has >= ~8 steps when M allows (megacore sharding + warm pipeline).
    rt = _round_up(min(row_tile, max(M, 1)), 8)
    rt = max(8, min(rt, _round_up(pl.cdiv(M, 8), 8)))
    grid_m = pl.cdiv(M, rt)      # ragged tail handled by Pallas boundary masking

    bp2d = b_proj.reshape(1, P).astype(jnp.float32)
    bf2d = b_fc.reshape(1, C).astype(jnp.float32)

    if cast_weights_bf16:
        # Cast ONLY the (small) weights here; x stays in the caller's dtype so
        # we never add an extra HBM pass over the activation stream.
        w_proj = w_proj.astype(jnp.bfloat16)
        w_fc = w_fc.astype(jnp.bfloat16)

    # --- VMEM budget (lane-padded tiles; inputs/outputs double-buffered).
    lane = 128
    xb = jnp.dtype(x2d.dtype).itemsize
    wb = jnp.dtype(w_proj.dtype).itemsize
    vmem_est = (
        2 * rt * _round_up(D_in, lane) * xb            # x tile, double-buffered
        + 2 * rt * _round_up(C, lane) * 4              # out tile (f32), double-buffered
        + 2 * (_round_up(D_in, 8) * _round_up(P, lane) * wb
               + _round_up(P, 8) * _round_up(C, lane) * wb
               + 8 * _round_up(P, lane) * 4
               + 8 * _round_up(C, lane) * 4)           # constants (fetched once)
    )
    vmem_limit = int(min(max(vmem_est + (4 << 20), 32 << 20), 56 << 20))

    out2d = pl.pallas_call(
        _finetuned_kernel,
        out_shape=jax.ShapeDtypeStruct((M, C), jnp.float32),
        grid_spec=pltpu.PrefetchScalarGridSpec(
            num_scalar_prefetch=0,
            grid=(grid_m,),
            in_specs=[
                pl.BlockSpec((rt, D_in), lambda i: (i, 0)),
                pl.BlockSpec((D_in, P), lambda i: (0, 0)),
                pl.BlockSpec((1, P), lambda i: (0, 0)),
                pl.BlockSpec((P, C), lambda i: (0, 0)),
                pl.BlockSpec((1, C), lambda i: (0, 0)),
            ],
            # Unpadded class dim: block last dim == full array dim (legal),
            # writeback is C lanes/row instead of 128 and no post-slice pass.
            out_specs=pl.BlockSpec((rt, C), lambda i: (i, 0)),
        ),
        compiler_params=pltpu.CompilerParams(
            dimension_semantics=("parallel",),   # shards rows across v7x's 2 TCs
            vmem_limit_bytes=vmem_limit,
        ),
    )(x2d, w_proj, bp2d, w_fc, bf2d)

    return out2d.reshape(B, T, C)


if __name__ == "__main__":
    # Small config consistent with the module's forward pass.
    num_classes = 10
    output_dims = 32            # feature-extractor output dim
    B, T, D_in = 2, 8, 32

    key = jax.random.PRNGKey(0)
    k_x, k_wp, k_bp, k_wf, k_bf = jax.random.split(key, 5)

    x = jax.random.normal(k_x, (B, T, D_in), dtype=jnp.float32)
    # Deterministic synthetic parameters (stand-in for the pretrained ckpt).
    w_proj = jax.random.normal(k_wp, (D_in, output_dims), jnp.float32) * 0.1
    b_proj = jax.random.normal(k_bp, (output_dims,), jnp.float32) * 0.1
    w_fc = jax.random.normal(k_wf, (output_dims, num_classes), jnp.float32) * 0.1
    b_fc = jax.random.normal(k_bf, (num_classes,), jnp.float32) * 0.1

    ref = jnp.maximum(x @ w_proj + b_proj, 0.0) @ w_fc + b_fc

    # f32 path (exact semantics).
    out = finetuned_forward(x, w_proj, b_proj, w_fc, b_fc)
    jax.block_until_ready(out)
    assert out.shape == (B, T, num_classes)
    assert jnp.allclose(out, ref, atol=1e-5, rtol=1e-5)

    # bf16 perf path: x arrives in bf16 from upstream, weights cast once here.
    out_bf16 = finetuned_forward(x.astype(jnp.bfloat16), w_proj, b_proj,
                                 w_fc, b_fc, cast_weights_bf16=True)
    jax.block_until_ready(out_bf16)
    assert jnp.allclose(out_bf16, ref, atol=5e-2, rtol=5e-2)

    # Ragged-M path (M=15): exercises cdiv grid + masked boundary block,
    # with no wrapper-side padding pass over x.
    x_odd = jax.random.normal(key, (3, 5, D_in), dtype=jnp.float32)
    out_odd = finetuned_forward(x_odd, w_proj, b_proj, w_fc, b_fc)
    jax.block_until_ready(out_odd)
    ref_odd = jnp.maximum(x_odd @ w_proj + b_proj, 0.0) @ w_fc + b_fc
    assert out_odd.shape == (3, 5, num_classes)
    assert jnp.allclose(out_odd, ref_odd, atol=1e-5, rtol=1e-5)

    print("KERNEL_OK")
</pallas_src>

<mosaic_0001>
module attributes {stable_mosaic.version = 11 : i64} {
  func.func @_finetuned_kernel(%arg0: i32, %arg1: memref<8x32xf32, #tpu.memory_space<vmem>>, %arg2: memref<32x32xf32, #tpu.memory_space<vmem>>, %arg3: memref<1x32xf32, #tpu.memory_space<vmem>>, %arg4: memref<32x10xf32, #tpu.memory_space<vmem>>, %arg5: memref<1x10xf32, #tpu.memory_space<vmem>>, %arg6: memref<8x10xf32, #tpu.memory_space<vmem>>) attributes {dimension_semantics = [#tpu.dimension_semantics<parallel>], iteration_bounds = array<i64: 2>, scalar_prefetch = 0 : i64, scratch_operands = 0 : i64, tpu.core_type = #tpu.core_type<tc>, window_params = [{transform_indices = @transform_0, window_bounds = array<i64: 8, 32>}, {pipeline_mode = #tpu.pipeline_mode<synchronous>, transform_indices = @transform_1, window_bounds = array<i64: 32, 32>}, {pipeline_mode = #tpu.pipeline_mode<synchronous>, transform_indices = @transform_2, window_bounds = array<i64: 1, 32>}, {pipeline_mode = #tpu.pipeline_mode<synchronous>, transform_indices = @transform_3, window_bounds = array<i64: 32, 10>}, {pipeline_mode = #tpu.pipeline_mode<synchronous>, transform_indices = @transform_4, window_bounds = array<i64: 1, 10>}, {transform_indices = @transform_5, window_bounds = array<i64: 8, 10>}]} {
    %c0 = arith.constant 0 : index
    %c0_0 = arith.constant 0 : index
    %0 = vector.load %arg1[%c0, %c0_0] : memref<8x32xf32, #tpu.memory_space<vmem>>, vector<8x32xf32>
    %c0_1 = arith.constant 0 : index
    %c0_2 = arith.constant 0 : index
    %1 = vector.load %arg2[%c0_1, %c0_2] : memref<32x32xf32, #tpu.memory_space<vmem>>, vector<32x32xf32>
    %cst = arith.constant dense<0.000000e+00> : vector<8x32xf32>
    %2 = tpu.matmul %0, %1, %cst {dimension_numbers = #tpu.dot_dimension_numbers<[1], [0], [0], [1], [0, 0, 1, 1], [], []>} : vector<8x32xf32>, vector<32x32xf32>, vector<8x32xf32> -> vector<8x32xf32>
    %c0_3 = arith.constant 0 : index
    %c0_4 = arith.constant 0 : index
    %3 = vector.load %arg3[%c0_3, %c0_4] : memref<1x32xf32, #tpu.memory_space<vmem>>, vector<1x32xf32>
    %4 = vector.broadcast %3 : vector<1x32xf32> to vector<8x32xf32>
    %5 = arith.addf %2, %4 : vector<8x32xf32>
    %cst_5 = arith.constant 0.000000e+00 : f32
    %6 = vector.broadcast %cst_5 : f32 to vector<8x32xf32>
    %7 = arith.maximumf %5, %6 : vector<8x32xf32>
    %c0_6 = arith.constant 0 : index
    %c0_7 = arith.constant 0 : index
    %8 = vector.load %arg4[%c0_6, %c0_7] : memref<32x10xf32, #tpu.memory_space<vmem>>, vector<32x10xf32>
    %cst_8 = arith.constant dense<0.000000e+00> : vector<8x10xf32>
    %9 = tpu.matmul %7, %8, %cst_8 {dimension_numbers = #tpu.dot_dimension_numbers<[1], [0], [0], [1], [0, 0, 1, 1], [], []>} : vector<8x32xf32>, vector<32x10xf32>, vector<8x10xf32> -> vector<8x10xf32>
    %c0_9 = arith.constant 0 : index
    %c0_10 = arith.constant 0 : index
    %10 = vector.load %arg5[%c0_9, %c0_10] : memref<1x10xf32, #tpu.memory_space<vmem>>, vector<1x10xf32>
    %11 = vector.broadcast %10 : vector<1x10xf32> to vector<8x10xf32>
    %12 = arith.addf %9, %11 : vector<8x10xf32>
    %c0_11 = arith.constant 0 : index
    %c0_12 = arith.constant 0 : index
    %13 = vector.load %arg6[%c0_11, %c0_12] : memref<8x10xf32, #tpu.memory_space<vmem>>, vector<8x10xf32>
    tpu.vector_store %arg6[%c0_11, %c0_12], %12 {strides = array<i32>} : memref<8x10xf32, #tpu.memory_space<vmem>>, vector<8x10xf32>,
    return
  }
  func.func @transform_0(%arg0: i32) -> (i32, i32) {
    %c0_i32 = arith.constant 0 : i32
    %c0_i32_0 = arith.constant 0 : i32
    return %arg0, %c0_i32 : i32, i32
  }
  func.func @transform_1(%arg0: i32) -> (i32, i32) {
    %c0_i32 = arith.constant 0 : i32
    %c0_i32_0 = arith.constant 0 : i32
    %c0_i32_1 = arith.constant 0 : i32
    return %c0_i32, %c0_i32_0 : i32, i32
  }
  func.func @transform_2(%arg0: i32) -> (i32, i32) {
    %c0_i32 = arith.constant 0 : i32
    %c0_i32_0 = arith.constant 0 : i32
    %c0_i32_1 = arith.constant 0 : i32
    return %c0_i32, %c0_i32_0 : i32, i32
  }
  func.func @transform_3(%arg0: i32) -> (i32, i32) {
    %c0_i32 = arith.constant 0 : i32
    %c0_i32_0 = arith.constant 0 : i32
    %c0_i32_1 = arith.constant 0 : i32
    return %c0_i32, %c0_i32_0 : i32, i32
  }
  func.func @transform_4(%arg0: i32) -> (i32, i32) {
    %c0_i32 = arith.constant 0 : i32
    %c0_i32_0 = arith.constant 0 : i32
    %c0_i32_1 = arith.constant 0 : i32
    return %c0_i32, %c0_i32_0 : i32, i32
  }
  func.func @transform_5(%arg0: i32) -> (i32, i32) {
    %c0_i32 = arith.constant 0 : i32
    %c0_i32_0 = arith.constant 0 : i32
    return %arg0, %c0_i32 : i32, i32
  }
}

</mosaic_0001>

<bundles_post_ra>
// kernel: tpu_custom_call.1
= control target key start
LH: loop header
LB: loop body
LE: loop exit
PB: predicated region body
PF: predicated region fallthrough
CT: control target
= control target key end

     0   :  { %10 = vsyncpa [#allocation3], 0  ;;  %s624_s0 = inlined_call_operand.vmem [shape: f32[16,32], index: 0, kind: input, shape index: {}]   ;;  %s625_s1 = inlined_call_operand.vmem [shape: f32[32,32], index: 1, kind: input, shape index: {}]   ;;  %s626_s2 = inlined_call_operand.vmem [shape: f32[1,32], index: 2, kind: input, shape index: {}]   ;;  %s627_s3 = inlined_call_operand.vmem [shape: f32[32,10], index: 3, kind: input, shape index: {}]   ;;  %s628_s4 = inlined_call_operand.vmem [shape: f32[1,10], index: 4, kind: input, shape index: {}]   ;;  %s629_s5 = inlined_call_operand.hbm [shape: f32[16,10], index: 5, kind: output, shape index: {}]  }
   0x1   :  { %12 = vsyncpa [#allocation3 + $0x1], 0  ;;  %s509_s18 = smov 0   ;;  %s511_s19 = smov 0  }
   0x2   :  { %s513_s20 = smov 0   ;;  %s515_s21 = smov 0  }
   0x3 LB: > { %s530_s22 = sadd.s32 4294967295, %s477_s21   ;;  %s362_s23 = sadd.s32 4294967294, %s477_s21   ;;  %s477_s21 = sphi %s515_s21, %s635_s21   ;;  %s473_s20 = sphi %s513_s20, %s634_s20   ;;  %s469_s19 = sphi %s511_s19, %s633_s19   ;;  %s465_s18 = sphi %s509_s18, %s632_s18  }
   0x4   : > { %s534_s24 = sadd.s32 1, %s477_s21   ;;  %s135_s25 = sadd.s32 1, %s473_s20 }
   0x5   : > { %s132_s26 = ssub.s32 %s477_s21, %s534_s24  ;;  %p145_p0 = scmp.ne.s32.totalorder %s473_s20, %s469_s19 }
   0x6   : > { %p133_p1 = scmp.eq.s32.totalorder %s132_s26, 0  ;;  %p146_p2 = scmp.eq.s32.totalorder %s530_s22, 1 }
   0x7   : > { %p151_p3 = scmp.ne.s32.totalorder %s469_s19, %s465_s18  ;;  %p152_p4 = scmp.eq.s32.totalorder %s362_s23, 1 }
   0x8   : > { %s545_s27 = scalar_select %p133_p1, %s473_s20, %s135_s25  }
   0x9   : > { %p547_p5 = por %p146_p2, %p145_p0  ;;  %p551_p6 = por %p152_p4, %p151_p3 }
   0xa   : > { %p365_p7 = scmp.ge.s32.totalorder %s477_s21, 1  ;;  %p189_p8 = scmp.lt.s32.totalorder %s477_s21, 3 }
   0xc   : > { %p190_p9 = pnand %p365_p7, %p189_p8 }
   0xd   : > { %p216_p10 = scmp.lt.s32.totalorder (!%p190_p9), %s530_s22, 1  ;;  %s213_s12 = sand.u32 (!%p190_p9), 1, %s469_s19  }
   0xe   : > { %193 = sbr.rel (%p190_p9) target bundleno = 288 (0x120), region = 40  ;;  %s371_s14 = sshll.u32 (!%p190_p9), %s530_s22, 3 }
   0xf   : > { %s298_s17 = scalar_lea.hbm (!%p190_p9), %s629_s5, %s371_s14  ;;  %s288_s7 = scalar_lea.sflag (!%p190_p9), [#allocation3], %s213_s12 }
  0x10   : > { %s302_s6 = sshll.u32 (!%p190_p9), %s298_s17, 4  ;;  %s435_s11 = scalar_lea.hbm (!%p190_p9), %s629_s5, 16  ;;  %s303_s6 = int_to_ptr.hbm [resolvable:$true] %s302_s6 }
  0x13   : > { %v224_v0 = vld [vmem:[%s625_s1 + $0x18] sm:$0xff]  ;;  %v223_v1 = vld [vmem:[%s625_s1 + $0x10] sm:$0xff]  ;;  %v222_v3 = vld [vmem:[%s625_s1 + $0x8] sm:$0xff]  ;;  %s217_s13 = scalar_select %p216_p10, %s530_s22, 1  ;;  %vm229_vm0 = vcmask 261120   ;;  %vm285_vm1 = vcmask 80896  }
  0x14   : > { %245 = vmatpush.msra.mxu0 %v224_v0  ;;  %v257_v2 = vld [vmem:[%s627_s3 + $0x18] sm:$0xff]  ;;  %v221_v4 = vld [vmem:[%s625_s1] sm:$0xff]  ;;  %v256_v6 = vld [vmem:[%s627_s3 + $0x10] sm:$0xff]  ;;  %s429_s22 = sshra.s32 %s303_s6, 4  ;;  %s430_s22 = int_to_ptr.hbm [resolvable:$true] %s429_s22 }
  0x15   : > { %277 = vmatpush.msra.mxu1 %v257_v2  ;;  %s367_s16 = sshll.u32 %s217_s13, 3  ;;  %v255_v7 = vld [vmem:[%s627_s3 + $0x8] sm:$0xff]  ;;  %v254_v8 = vld [vmem:[%s627_s3] sm:$0xff]  ;;  %s366_s13 = sshll.u32 %s213_s12, 3 }
  0x16   : > { %246 = vmatpush.msra.mxu0 %v223_v1  ;;  %s219_s25 = scalar_lea.vmem %s624_s0, %s367_s16  ;;  %v413_v9 = vld [vmem:[%s626_s2] ss:$0 sm:$0xff]  ;;  %s215_s26 = scalar_lea.vmem [#allocation2], %s366_s13 }
  0x17   : > { %v220_v5 = vld [vmem:[%s219_s25] sm:$0xff]  ;;  %278 = vmatpush.msra.mxu1 %v256_v6  ;;  %s300_s30 = sshll.u32 %s215_s26, 4  ;;  %s431_s8 = scalar_lea.hbm %s430_s22, 8  ;;  %s301_s30 = int_to_ptr.vmem [resolvable:$true] %s300_s30 }
  0x18   : > { %247 = vmatpush.msra.mxu0 %v222_v3  ;;  %v414_v13 = vld [vmem:[%s628_s4] ss:$0 sm:$0xff]  ;;  %p432_p11 = scmp.ne.s32.totalorder %s430_s22, %s431_s8  ;;  %p436_p0 = scmp.lt.s32.totalorder %s430_s22, %s629_s5 }
  0x19   : > { %279 = vmatpush.msra.mxu1 %v255_v7  ;;  %p437_p1 = scmp.lt.s32.totalorder %s435_s11, %s431_s8 }
  0x1a   : > { %248 = vmatpush.msra.mxu0 %v221_v4  ;;  %p433_p12 = pnand %p432_p11, %p547_p5 }
  0x1b   : > { %368 = vmatmul.msk.f32.vlgmr.msra.gmra.mxu0 %vm229_vm0, %v220_v5  ;;  %280 = vmatpush.msra.mxu1 %v254_v8  ;;  %p438_p2 = por %p437_p1, %p436_p0 }
  0x1c   : > { %p434_p13 = pneg %p433_p12 }
  0x1e   : > { %p439_p3 = pnand %p438_p2, %p434_p13 }
  0x98   : > { %v250_v10 = vpop.f32.mrf.mxu0 }
  0x99   : > { %v251_v11 = vadd.f32 %v413_v9, %v250_v10 }
  0x9b   : > { %v253_v12 = vmax.f32 %v251_v11, 0.0 }
  0x9d   : > { %369 = vmatmul.msk.f32.vlgmr.msra.gmra.mxu1 %vm229_vm0, %v253_v12 }
 0x11a   : > { %v282_v14 = vpop.f32.mrf.mxu1 }
 0x11b   : > { %v283_v15 = vadd.f32 %v414_v13, %v282_v14 }
 0x11d   : > { %286 = vst.msk [vmem:[%s215_s26] sm:$0xff] %vm285_vm1, %v283_v15 }
 0x11e   : > { %442 = shalt.err (!%p439_p3)
}
 0x11f   : > { %374 = dma.vmem_to_hbm [thread:$0]  (%p547_p5), %s301_s30, 128, %s303_s6, %s288_s7  }
 0x120 PF: > { %p380_p4 = scmp.ge.s32.totalorder %s477_s21, 2  ;;  %s314_s12 = sand.u32 1, %s465_s18  }
 0x121   : > { %s315_s15 = scalar_lea.sflag [#allocation3], %s314_s12 }
 0x122   : > { %p377_p7 = pnand %p380_p4, %p551_p6 }
 0x124   : > { %p378_p8 = pneg %p377_p7 }
 0x126   : > { %460 = dma.done.wait (%p378_p8), %s315_s15, 128  }
 0x127   : > { %462 = vsyncadd (%p378_p8), %s315_s15, 4294967168  ;;  %p15_p9 = scmp.ge.s32.totalorder %s534_s24, 4   ;;  %s632_s18 = smov %s469_s19 }
 0x128   : > { %s633_s19 = smov %s473_s20  ;;  %s634_s20 = smov %s545_s27 }
 0x129   : > { %s635_s21 = smov %s534_s24  ;;  %17 = sbr.rel (!%p15_p9) target bundleno = 3 (0x3), region = 75 }
 0x12e   :  { %321 = vsyncpa [#allocation3], 1 }
 0x12f   :  { %323 = vsyncpa [#allocation3 + $0x1], 1 }

</bundles_post_ra>
